<compile_context>
chip_gen: v7x
topology: tpu7x:2x2x1
jax: 0.10.0
libtpu: 0.0.40
codegen_flags: <defaults>
</compile_context>

<pallas_src>
import math

import jax
import jax.numpy as jnp
from jax.experimental import pallas as pl
from jax.experimental.pallas import tpu as pltpu

# ---- small, self-consistent shapes ------------------------------------------
B, S, H = 2, 8, 32      # batch, seq len, hidden dim
Z = 16                  # latent dim
A = 16                  # attention hidden dim
V = 128                 # vocab size (decoder logits) -- 128 => lane-dense stores


# ---- fused forward kernel ----------------------------------------------------
def _fused_kernel(doc_ref, summ_ref, rnd_ref,
                  ve_ref, pr_ref, za_ref, ca_ref,
                  dzc_ref, dd_ref, dout_ref,
                  stats_ref, logits_ref):
    F_, B_, S_, H_ = doc_ref.shape

    doc = doc_ref[...]                                    # (F, B, S, H)
    summ = summ_ref[...]                                  # (B, S, H)

    # mean-pool tokens (stand-in encoder pooling for the undefined submodules)
    d_pool = jnp.mean(doc, axis=2).reshape(F_ * B_, H_)   # (F*B, H)
    s_pool = jnp.mean(summ, axis=1)                       # (B, H)
    s_rep = jnp.broadcast_to(s_pool[None], (F_, B_, H_)).reshape(F_ * B_, H_)

    # --- var_encoder: one packed matmul for all fields: [d|s] -> [mu|lv|enc] --
    ds = jnp.concatenate([d_pool, s_rep], axis=-1)        # (F*B, 2H)
    ve = ve_ref[...]                                      # (2H+1, 2Z+H)
    ve_out = (jnp.dot(ds, ve[:2 * H_], preferred_element_type=jnp.float32)
              + ve[2 * H_:])                              # (F*B, 2Z+H)
    mu_q = ve_out[:, :Z]                                  # (F*B, Z)
    lv_q = ve_out[:, Z:2 * Z]                             # (F*B, Z)
    enc = jnp.tanh(ve_out[:, 2 * Z:])                     # (F*B, H)

    # --- prior_net: one packed matmul for all fields: d -> [mu_p|lv_p] --------
    pr = pr_ref[...]                                      # (H+1, 2Z)
    pr_out = (jnp.dot(d_pool, pr[:H_], preferred_element_type=jnp.float32)
              + pr[H_:])                                  # (F*B, 2Z)
    mu_p = pr_out[:, :Z]
    lv_p = pr_out[:, Z:]

    # --- reparameterize (uniform noise: matches torch.rand_like in the spec) --
    rnd = rnd_ref[...].reshape(F_ * B_, Z)
    z = rnd * jnp.exp(lv_q * 0.5) + mu_q                  # (F*B, Z)

    # --- z_attention: softmax pooling over the F fields -----------------------
    za = za_ref[...]                                      # (Z+1, A)
    e_z = jnp.tanh(jnp.dot(z, za[:Z], preferred_element_type=jnp.float32))
    s_z = jnp.sum(e_z * za[Z:], axis=-1, keepdims=True).reshape(F_, B_, 1)
    m_z = jnp.max(s_z, axis=0, keepdims=True)
    w_z = jnp.exp(s_z - m_z)
    w_z = w_z / jnp.sum(w_z, axis=0, keepdims=True)
    large_z = jnp.sum(w_z * z.reshape(F_, B_, Z), axis=0)  # (B, Z)

    # --- c_attention: softmax pooling over the F fixed encodings --------------
    ca = ca_ref[...]                                      # (H+1, A)
    e_c = jnp.tanh(jnp.dot(enc, ca[:H_], preferred_element_type=jnp.float32))
    s_c = jnp.sum(e_c * ca[H_:], axis=-1, keepdims=True).reshape(F_, B_, 1)
    m_c = jnp.max(s_c, axis=0, keepdims=True)
    w_c = jnp.exp(s_c - m_c)
    w_c = w_c / jnp.sum(w_c, axis=0, keepdims=True)
    context = jnp.sum(w_c * enc.reshape(F_, B_, H_), axis=0)  # (B, H)

    # --- decoder: flattened (B*S) 2D matmuls + lane-dense logits --------------
    dzc = dzc_ref[...]                                    # (Z+H+1, H)
    zc = jnp.concatenate([large_z, context], axis=-1)     # (B, Z+H)
    zc_proj = (jnp.dot(zc, dzc[:Z + H_], preferred_element_type=jnp.float32)
               + dzc[Z + H_:])                            # (B, H)

    summ_flat = summ.reshape(B_ * S_, H_)                 # (B*S, H)
    h = jnp.dot(summ_flat, dd_ref[...], preferred_element_type=jnp.float32)
    h = jnp.tanh(h.reshape(B_, S_, H_) + zc_proj[:, None, :]).reshape(B_ * S_, H_)

    dout = dout_ref[...]                                  # (H+1, V)
    logits = (jnp.dot(h, dout[:H_], preferred_element_type=jnp.float32)
              + dout[H_:])                                # (B*S, V)
    logits_ref[...] = logits.reshape(B_, S_, V)

    # --- required stats output: [mu_q | lv_q | mu_p | lv_p] -------------------
    stats = jnp.concatenate([mu_q, lv_q, mu_p, lv_p], axis=-1)
    stats_ref[...] = stats.reshape(F_, B_, 4 * Z)


def _full_spec(shape):
    return pl.BlockSpec(shape, lambda i, n=len(shape): (0,) * n)


def fused_forward(params, doc_stack, summ, rnd):
    F = doc_stack.shape[0]
    ins = (doc_stack, summ, rnd,
           params["ve_pack"], params["prior_pack"], params["za_pack"],
           params["ca_pack"], params["dzc_pack"], params["dd"],
           params["dout_pack"])
    out_shapes = (jax.ShapeDtypeStruct((F, B, 4 * Z), jnp.float32),   # stats
                  jax.ShapeDtypeStruct((B, S, V), jnp.float32))       # logits

    flops = 2 * (F * B) * (2 * H) * (2 * Z + H)      # var_encoder
    flops += 2 * (F * B) * H * (2 * Z)               # prior_net
    flops += 2 * (F * B) * Z * A + 2 * (F * B) * H * A   # attentions
    flops += 2 * B * (Z + H) * H                     # decoder z/c proj
    flops += 2 * (B * S) * H * H + 2 * (B * S) * H * V   # decoder body + logits
    transcendentals = (F * B) * (H + Z + 2 * A + 2) + (B * S) * H
    bytes_accessed = (sum(int(x.size) for x in ins)
                      + sum(math.prod(o.shape) for o in out_shapes)) * 4

    return pl.pallas_call(
        _fused_kernel,
        grid=(1,),
        in_specs=[_full_spec(x.shape) for x in ins],
        out_specs=[_full_spec(o.shape) for o in out_shapes],
        out_shape=out_shapes,
        # TODO(synk): if F or B grows, expose it as a "parallel" grid axis so
        # v7x's two TensorCores split the work; at F=B=2 one core is fine.
        compiler_params=pltpu.CompilerParams(
            dimension_semantics=("arbitrary",)),
        cost_estimate=pl.CostEstimate(
            flops=flops, transcendentals=transcendentals,
            bytes_accessed=bytes_accessed),
    )(*ins)


# ---- parameters (deterministic synthetic init, row-packed weight+bias) -------
def init_params(key):
    names = ["ve_w", "pr_w", "za_w", "za_v", "ca_w", "ca_v",
             "dzc_w", "dd_w", "dout_w"]
    keys = {n: jax.random.fold_in(key, i) for i, n in enumerate(names)}

    def w(name, shape, scale=0.05):
        return (scale * jax.random.normal(keys[name], shape)).astype(jnp.float32)

    def zrow(n):
        return jnp.zeros((1, n), jnp.float32)

    return {
        # var_encoder: [pooled_doc | pooled_summ] (2H) -> [mu_q | lv_q | enc]; last row = bias
        "ve_pack": jnp.concatenate([w("ve_w", (2 * H, 2 * Z + H)), zrow(2 * Z + H)], axis=0),
        # prior_net: pooled_doc (H) -> [mu_p | lv_p]; last row = bias
        "prior_pack": jnp.concatenate([w("pr_w", (H, 2 * Z)), zrow(2 * Z)], axis=0),
        # z_attention: rows 0:Z = W, row Z = v
        "za_pack": jnp.concatenate([w("za_w", (Z, A)), w("za_v", (1, A))], axis=0),
        # c_attention: rows 0:H = W, row H = v
        "ca_pack": jnp.concatenate([w("ca_w", (H, A)), w("ca_v", (1, A))], axis=0),
        # decoder [large_z | context] -> hidden; last row = hidden bias
        "dzc_pack": jnp.concatenate([w("dzc_w", (Z + H, H)), zrow(H)], axis=0),
        # decoder summ projection
        "dd": w("dd_w", (H, H)),
        # decoder output projection; last row = output bias
        "dout_pack": jnp.concatenate([w("dout_w", (H, V)), zrow(V)], axis=0),
    }


# ---- full forward pass, mirroring SelfAttnCVAE.forward -----------------------
def self_attn_cvae_forward(params, batch_fields, summ, rng_key):
    # filter fields whose name contains 'doc' (mirrors the torch filter)
    fields = [f for f in batch_fields if "doc" in f]
    doc_stack = jnp.stack([batch_fields[f] for f in fields], axis=0)  # (F,B,S,H)

    # torch.rand_like -> uniform [0,1) noise (NOT gaussian); reparam is fused
    # into the kernel.
    rnd = jax.random.uniform(rng_key, (len(fields), B, Z), dtype=jnp.float32)

    stats, recon_logits = fused_forward(params, doc_stack, summ, rnd)

    variational_params = {}
    prior_params = {}
    for i, f in enumerate(fields):
        variational_params[f] = (stats[i, :, :Z], stats[i, :, Z:2 * Z])
        prior_params[f] = (stats[i, :, 2 * Z:3 * Z], stats[i, :, 3 * Z:])
    return variational_params, prior_params, recon_logits


if __name__ == "__main__":
    key = jax.random.PRNGKey(0)
    pkey, dkey, skey, rkey = jax.random.split(key, 4)

    params = init_params(pkey)

    # synthetic "batch": two doc fields (used) plus one non-doc field (filtered out)
    batch_fields = {
        "doc_lead": jax.random.normal(jax.random.fold_in(dkey, 0), (B, S, H), jnp.float32),
        "doc_body": jax.random.normal(jax.random.fold_in(dkey, 1), (B, S, H), jnp.float32),
        "title":    jax.random.normal(jax.random.fold_in(dkey, 2), (B, S, H), jnp.float32),
    }
    summ = jax.random.normal(skey, (B, S, H), jnp.float32)

    fwd = jax.jit(self_attn_cvae_forward)
    variational_params, prior_params, recon_logits = fwd(
        params, batch_fields, summ, rkey)

    jax.block_until_ready(recon_logits)
    assert recon_logits.shape == (B, S, V)
    assert set(variational_params) == {"doc_lead", "doc_body"}
    assert set(prior_params) == {"doc_lead", "doc_body"}
    for f in variational_params:
        assert variational_params[f][0].shape == (B, Z)
        assert variational_params[f][1].shape == (B, Z)
        assert prior_params[f][0].shape == (B, Z)
        assert prior_params[f][1].shape == (B, Z)
        assert bool(jnp.all(jnp.isfinite(variational_params[f][0])))
    assert bool(jnp.all(jnp.isfinite(recon_logits)))
    print("KERNEL_OK")
</pallas_src>

<mosaic_0001>
module attributes {stable_mosaic.version = 11 : i64} {
  func.func @_fused_kernel(%arg0: i32, %arg1: memref<2x2x8x32xf32, #tpu.memory_space<vmem>>, %arg2: memref<2x8x32xf32, #tpu.memory_space<vmem>>, %arg3: memref<2x2x16xf32, #tpu.memory_space<vmem>>, %arg4: memref<65x64xf32, #tpu.memory_space<vmem>>, %arg5: memref<33x32xf32, #tpu.memory_space<vmem>>, %arg6: memref<17x16xf32, #tpu.memory_space<vmem>>, %arg7: memref<33x16xf32, #tpu.memory_space<vmem>>, %arg8: memref<49x32xf32, #tpu.memory_space<vmem>>, %arg9: memref<32x32xf32, #tpu.memory_space<vmem>>, %arg10: memref<33x128xf32, #tpu.memory_space<vmem>>, %arg11: memref<2x2x64xf32, #tpu.memory_space<vmem>>, %arg12: memref<2x8x128xf32, #tpu.memory_space<vmem>>) attributes {dimension_semantics = [#tpu.dimension_semantics<arbitrary>], iteration_bounds = array<i64: 1>, scalar_prefetch = 0 : i64, scratch_operands = 0 : i64, tpu.core_type = #tpu.core_type<tc>, window_params = [{pipeline_mode = #tpu.pipeline_mode<synchronous>, transform_indices = @transform_0, window_bounds = array<i64: 2, 2, 8, 32>}, {pipeline_mode = #tpu.pipeline_mode<synchronous>, transform_indices = @transform_1, window_bounds = array<i64: 2, 8, 32>}, {pipeline_mode = #tpu.pipeline_mode<synchronous>, transform_indices = @transform_2, window_bounds = array<i64: 2, 2, 16>}, {pipeline_mode = #tpu.pipeline_mode<synchronous>, transform_indices = @transform_3, window_bounds = array<i64: 65, 64>}, {pipeline_mode = #tpu.pipeline_mode<synchronous>, transform_indices = @transform_4, window_bounds = array<i64: 33, 32>}, {pipeline_mode = #tpu.pipeline_mode<synchronous>, transform_indices = @transform_5, window_bounds = array<i64: 17, 16>}, {pipeline_mode = #tpu.pipeline_mode<synchronous>, transform_indices = @transform_6, window_bounds = array<i64: 33, 16>}, {pipeline_mode = #tpu.pipeline_mode<synchronous>, transform_indices = @transform_7, window_bounds = array<i64: 49, 32>}, {pipeline_mode = #tpu.pipeline_mode<synchronous>, transform_indices = @transform_8, window_bounds = array<i64: 32, 32>}, {pipeline_mode = #tpu.pipeline_mode<synchronous>, transform_indices = @transform_9, window_bounds = array<i64: 33, 128>}, {pipeline_mode = #tpu.pipeline_mode<synchronous>, transform_indices = @transform_10, window_bounds = array<i64: 2, 2, 64>}, {pipeline_mode = #tpu.pipeline_mode<synchronous>, transform_indices = @transform_11, window_bounds = array<i64: 2, 8, 128>}]} {
    %c0 = arith.constant 0 : index
    %c0_0 = arith.constant 0 : index
    %c0_1 = arith.constant 0 : index
    %c0_2 = arith.constant 0 : index
    %0 = vector.load %arg1[%c0, %c0_0, %c0_1, %c0_2] : memref<2x2x8x32xf32, #tpu.memory_space<vmem>>, vector<2x2x8x32xf32>
    %c0_3 = arith.constant 0 : index
    %c0_4 = arith.constant 0 : index
    %c0_5 = arith.constant 0 : index
    %1 = vector.load %arg2[%c0_3, %c0_4, %c0_5] : memref<2x8x32xf32, #tpu.memory_space<vmem>>, vector<2x8x32xf32>
    %cst = arith.constant dense<0.000000e+00> : vector<2x2x32xf32>
    %2 = vector.multi_reduction <add>, %0, %cst [2] : vector<2x2x8x32xf32> to vector<2x2x32xf32>
    %cst_6 = arith.constant 8.000000e+00 : f32
    %3 = vector.broadcast %cst_6 : f32 to vector<2x2x32xf32>
    %4 = arith.divf %2, %3 : vector<2x2x32xf32>
    %5 = vector.shape_cast %4 : vector<2x2x32xf32> to vector<4x32xf32>
    %cst_7 = arith.constant dense<0.000000e+00> : vector<2x32xf32>
    %6 = vector.multi_reduction <add>, %1, %cst_7 [1] : vector<2x8x32xf32> to vector<2x32xf32>
    %cst_8 = arith.constant 8.000000e+00 : f32
    %7 = vector.broadcast %cst_8 : f32 to vector<2x32xf32>
    %8 = arith.divf %6, %7 : vector<2x32xf32>
    %9 = vector.shape_cast %8 : vector<2x32xf32> to vector<1x2x32xf32>
    %10 = vector.shape_cast %9 : vector<1x2x32xf32> to vector<1x2x32xf32>
    %11 = vector.broadcast %10 : vector<1x2x32xf32> to vector<2x2x32xf32>
    %12 = vector.shape_cast %11 : vector<2x2x32xf32> to vector<4x32xf32>
    %13 = tpu.concatenate %5, %12 in 1 : vector<4x32xf32>, vector<4x32xf32> -> vector<4x64xf32>
    %c0_9 = arith.constant 0 : index
    %c0_10 = arith.constant 0 : index
    %14 = vector.load %arg4[%c0_9, %c0_10] : memref<65x64xf32, #tpu.memory_space<vmem>>, vector<65x64xf32>
    %15 = vector.extract_strided_slice %14 {offsets = [0, 0], sizes = [64, 64], strides = [1, 1]} : vector<65x64xf32> to vector<64x64xf32>
    %cst_11 = arith.constant dense<0.000000e+00> : vector<4x64xf32>
    %16 = tpu.matmul %13, %15, %cst_11 {dimension_numbers = #tpu.dot_dimension_numbers<[1], [0], [0], [1], [0, 0, 1, 1], [], []>} : vector<4x64xf32>, vector<64x64xf32>, vector<4x64xf32> -> vector<4x64xf32>
    %17 = vector.extract_strided_slice %14 {offsets = [64, 0], sizes = [1, 64], strides = [1, 1]} : vector<65x64xf32> to vector<1x64xf32>
    %18 = vector.broadcast %17 : vector<1x64xf32> to vector<4x64xf32>
    %19 = arith.addf %16, %18 : vector<4x64xf32>
    %20 = vector.extract_strided_slice %19 {offsets = [0, 0], sizes = [4, 16], strides = [1, 1]} : vector<4x64xf32> to vector<4x16xf32>
    %21 = vector.extract_strided_slice %19 {offsets = [0, 16], sizes = [4, 16], strides = [1, 1]} : vector<4x64xf32> to vector<4x16xf32>
    %22 = vector.extract_strided_slice %19 {offsets = [0, 32], sizes = [4, 32], strides = [1, 1]} : vector<4x64xf32> to vector<4x32xf32>
    %23 = math.tanh %22 : vector<4x32xf32>
    %c0_12 = arith.constant 0 : index
    %c0_13 = arith.constant 0 : index
    %24 = vector.load %arg5[%c0_12, %c0_13] : memref<33x32xf32, #tpu.memory_space<vmem>>, vector<33x32xf32>
    %25 = vector.extract_strided_slice %24 {offsets = [0, 0], sizes = [32, 32], strides = [1, 1]} : vector<33x32xf32> to vector<32x32xf32>
    %cst_14 = arith.constant dense<0.000000e+00> : vector<4x32xf32>
    %26 = tpu.matmul %5, %25, %cst_14 {dimension_numbers = #tpu.dot_dimension_numbers<[1], [0], [0], [1], [0, 0, 1, 1], [], []>} : vector<4x32xf32>, vector<32x32xf32>, vector<4x32xf32> -> vector<4x32xf32>
    %27 = vector.extract_strided_slice %24 {offsets = [32, 0], sizes = [1, 32], strides = [1, 1]} : vector<33x32xf32> to vector<1x32xf32>
    %28 = vector.broadcast %27 : vector<1x32xf32> to vector<4x32xf32>
    %29 = arith.addf %26, %28 : vector<4x32xf32>
    %30 = vector.extract_strided_slice %29 {offsets = [0, 0], sizes = [4, 16], strides = [1, 1]} : vector<4x32xf32> to vector<4x16xf32>
    %31 = vector.extract_strided_slice %29 {offsets = [0, 16], sizes = [4, 16], strides = [1, 1]} : vector<4x32xf32> to vector<4x16xf32>
    %c0_15 = arith.constant 0 : index
    %c0_16 = arith.constant 0 : index
    %c0_17 = arith.constant 0 : index
    %32 = vector.load %arg3[%c0_15, %c0_16, %c0_17] : memref<2x2x16xf32, #tpu.memory_space<vmem>>, vector<2x2x16xf32>
    %33 = vector.shape_cast %32 : vector<2x2x16xf32> to vector<4x16xf32>
    %cst_18 = arith.constant 5.000000e-01 : f32
    %34 = vector.broadcast %cst_18 : f32 to vector<4x16xf32>
    %35 = arith.mulf %21, %34 : vector<4x16xf32>
    %36 = math.exp %35 : vector<4x16xf32>
    %37 = arith.mulf %33, %36 : vector<4x16xf32>
    %38 = arith.addf %37, %20 : vector<4x16xf32>
    %c0_19 = arith.constant 0 : index
    %c0_20 = arith.constant 0 : index
    %39 = vector.load %arg6[%c0_19, %c0_20] : memref<17x16xf32, #tpu.memory_space<vmem>>, vector<17x16xf32>
    %40 = vector.extract_strided_slice %39 {offsets = [0, 0], sizes = [16, 16], strides = [1, 1]} : vector<17x16xf32> to vector<16x16xf32>
    %cst_21 = arith.constant dense<0.000000e+00> : vector<4x16xf32>
    %41 = tpu.matmul %38, %40, %cst_21 {dimension_numbers = #tpu.dot_dimension_numbers<[1], [0], [0], [1], [0, 0, 1, 1], [], []>} : vector<4x16xf32>, vector<16x16xf32>, vector<4x16xf32> -> vector<4x16xf32>
    %42 = math.tanh %41 : vector<4x16xf32>
    %43 = vector.extract_strided_slice %39 {offsets = [16, 0], sizes = [1, 16], strides = [1, 1]} : vector<17x16xf32> to vector<1x16xf32>
    %44 = vector.broadcast %43 : vector<1x16xf32> to vector<4x16xf32>
    %45 = arith.mulf %42, %44 : vector<4x16xf32>
    %cst_22 = arith.constant dense<0.000000e+00> : vector<4xf32>
    %46 = vector.multi_reduction <add>, %45, %cst_22 [1] : vector<4x16xf32> to vector<4xf32>
    %47 = vector.shape_cast %46 : vector<4xf32> to vector<4x1xf32>
    %48 = vector.shape_cast %47 : vector<4x1xf32> to vector<2x2x1xf32>
    %cst_23 = arith.constant dense<0xFF800000> : vector<2x1xf32>
    %49 = vector.multi_reduction <maximumf>, %48, %cst_23 [0] : vector<2x2x1xf32> to vector<2x1xf32>
    %50 = vector.shape_cast %49 : vector<2x1xf32> to vector<1x2x1xf32>
    %51 = vector.broadcast %50 : vector<1x2x1xf32> to vector<2x2x1xf32>
    %52 = arith.subf %48, %51 : vector<2x2x1xf32>
    %53 = math.exp %52 : vector<2x2x1xf32>
    %cst_24 = arith.constant dense<0.000000e+00> : vector<2x1xf32>
    %54 = vector.multi_reduction <add>, %53, %cst_24 [0] : vector<2x2x1xf32> to vector<2x1xf32>
    %55 = vector.shape_cast %54 : vector<2x1xf32> to vector<1x2x1xf32>
    %56 = vector.broadcast %55 : vector<1x2x1xf32> to vector<2x2x1xf32>
    %57 = arith.divf %53, %56 : vector<2x2x1xf32>
    %58 = vector.shape_cast %38 : vector<4x16xf32> to vector<2x2x16xf32>
    %59 = vector.broadcast %57 : vector<2x2x1xf32> to vector<2x2x16xf32>
    %60 = arith.mulf %59, %58 : vector<2x2x16xf32>
    %cst_25 = arith.constant dense<0.000000e+00> : vector<2x16xf32>
    %61 = vector.multi_reduction <add>, %60, %cst_25 [0] : vector<2x2x16xf32> to vector<2x16xf32>
    %c0_26 = arith.constant 0 : index
    %c0_27 = arith.constant 0 : index
    %62 = vector.load %arg7[%c0_26, %c0_27] : memref<33x16xf32, #tpu.memory_space<vmem>>, vector<33x16xf32>
    %63 = vector.extract_strided_slice %62 {offsets = [0, 0], sizes = [32, 16], strides = [1, 1]} : vector<33x16xf32> to vector<32x16xf32>
    %cst_28 = arith.constant dense<0.000000e+00> : vector<4x16xf32>
    %64 = tpu.matmul %23, %63, %cst_28 {dimension_numbers = #tpu.dot_dimension_numbers<[1], [0], [0], [1], [0, 0, 1, 1], [], []>} : vector<4x32xf32>, vector<32x16xf32>, vector<4x16xf32> -> vector<4x16xf32>
    %65 = math.tanh %64 : vector<4x16xf32>
    %66 = vector.extract_strided_slice %62 {offsets = [32, 0], sizes = [1, 16], strides = [1, 1]} : vector<33x16xf32> to vector<1x16xf32>
    %67 = vector.broadcast %66 : vector<1x16xf32> to vector<4x16xf32>
    %68 = arith.mulf %65, %67 : vector<4x16xf32>
    %cst_29 = arith.constant dense<0.000000e+00> : vector<4xf32>
    %69 = vector.multi_reduction <add>, %68, %cst_29 [1] : vector<4x16xf32> to vector<4xf32>
    %70 = vector.shape_cast %69 : vector<4xf32> to vector<4x1xf32>
    %71 = vector.shape_cast %70 : vector<4x1xf32> to vector<2x2x1xf32>
    %cst_30 = arith.constant dense<0xFF800000> : vector<2x1xf32>
    %72 = vector.multi_reduction <maximumf>, %71, %cst_30 [0] : vector<2x2x1xf32> to vector<2x1xf32>
    %73 = vector.shape_cast %72 : vector<2x1xf32> to vector<1x2x1xf32>
    %74 = vector.broadcast %73 : vector<1x2x1xf32> to vector<2x2x1xf32>
    %75 = arith.subf %71, %74 : vector<2x2x1xf32>
    %76 = math.exp %75 : vector<2x2x1xf32>
    %cst_31 = arith.constant dense<0.000000e+00> : vector<2x1xf32>
    %77 = vector.multi_reduction <add>, %76, %cst_31 [0] : vector<2x2x1xf32> to vector<2x1xf32>
    %78 = vector.shape_cast %77 : vector<2x1xf32> to vector<1x2x1xf32>
    %79 = vector.broadcast %78 : vector<1x2x1xf32> to vector<2x2x1xf32>
    %80 = arith.divf %76, %79 : vector<2x2x1xf32>
    %81 = vector.shape_cast %23 : vector<4x32xf32> to vector<2x2x32xf32>
    %82 = vector.broadcast %80 : vector<2x2x1xf32> to vector<2x2x32xf32>
    %83 = arith.mulf %82, %81 : vector<2x2x32xf32>
    %cst_32 = arith.constant dense<0.000000e+00> : vector<2x32xf32>
    %84 = vector.multi_reduction <add>, %83, %cst_32 [0] : vector<2x2x32xf32> to vector<2x32xf32>
    %c0_33 = arith.constant 0 : index
    %c0_34 = arith.constant 0 : index
    %85 = vector.load %arg8[%c0_33, %c0_34] : memref<49x32xf32, #tpu.memory_space<vmem>>, vector<49x32xf32>
    %86 = tpu.concatenate %61, %84 in 1 : vector<2x16xf32>, vector<2x32xf32> -> vector<2x48xf32>
    %87 = vector.extract_strided_slice %85 {offsets = [0, 0], sizes = [48, 32], strides = [1, 1]} : vector<49x32xf32> to vector<48x32xf32>
    %cst_35 = arith.constant dense<0.000000e+00> : vector<2x32xf32>
    %88 = tpu.matmul %86, %87, %cst_35 {dimension_numbers = #tpu.dot_dimension_numbers<[1], [0], [0], [1], [0, 0, 1, 1], [], []>} : vector<2x48xf32>, vector<48x32xf32>, vector<2x32xf32> -> vector<2x32xf32>
    %89 = vector.extract_strided_slice %85 {offsets = [48, 0], sizes = [1, 32], strides = [1, 1]} : vector<49x32xf32> to vector<1x32xf32>
    %90 = vector.broadcast %89 : vector<1x32xf32> to vector<2x32xf32>
    %91 = arith.addf %88, %90 : vector<2x32xf32>
    %92 = vector.shape_cast %1 : vector<2x8x32xf32> to vector<16x32xf32>
    %c0_36 = arith.constant 0 : index
    %c0_37 = arith.constant 0 : index
    %93 = vector.load %arg9[%c0_36, %c0_37] : memref<32x32xf32, #tpu.memory_space<vmem>>, vector<32x32xf32>
    %cst_38 = arith.constant dense<0.000000e+00> : vector<16x32xf32>
    %94 = tpu.matmul %92, %93, %cst_38 {dimension_numbers = #tpu.dot_dimension_numbers<[1], [0], [0], [1], [0, 0, 1, 1], [], []>} : vector<16x32xf32>, vector<32x32xf32>, vector<16x32xf32> -> vector<16x32xf32>
    %95 = vector.shape_cast %94 : vector<16x32xf32> to vector<2x8x32xf32>
    %96 = vector.shape_cast %91 : vector<2x32xf32> to vector<2x1x32xf32>
    %97 = vector.broadcast %96 : vector<2x1x32xf32> to vector<2x8x32xf32>
    %98 = arith.addf %95, %97 : vector<2x8x32xf32>
    %99 = math.tanh %98 : vector<2x8x32xf32>
    %100 = vector.shape_cast %99 : vector<2x8x32xf32> to vector<16x32xf32>
    %c0_39 = arith.constant 0 : index
    %c0_40 = arith.constant 0 : index
    %101 = vector.load %arg10[%c0_39, %c0_40] : memref<33x128xf32, #tpu.memory_space<vmem>>, vector<33x128xf32>
    %102 = vector.extract_strided_slice %101 {offsets = [0, 0], sizes = [32, 128], strides = [1, 1]} : vector<33x128xf32> to vector<32x128xf32>
    %cst_41 = arith.constant dense<0.000000e+00> : vector<16x128xf32>
    %103 = tpu.matmul %100, %102, %cst_41 {dimension_numbers = #tpu.dot_dimension_numbers<[1], [0], [0], [1], [0, 0, 1, 1], [], []>} : vector<16x32xf32>, vector<32x128xf32>, vector<16x128xf32> -> vector<16x128xf32>
    %104 = vector.extract_strided_slice %101 {offsets = [32, 0], sizes = [1, 128], strides = [1, 1]} : vector<33x128xf32> to vector<1x128xf32>
    %105 = vector.broadcast %104 : vector<1x128xf32> to vector<16x128xf32>
    %106 = arith.addf %103, %105 : vector<16x128xf32>
    %107 = vector.shape_cast %106 : vector<16x128xf32> to vector<2x8x128xf32>
    %c0_42 = arith.constant 0 : index
    %c0_43 = arith.constant 0 : index
    %c0_44 = arith.constant 0 : index
    %108 = vector.load %arg12[%c0_42, %c0_43, %c0_44] : memref<2x8x128xf32, #tpu.memory_space<vmem>>, vector<2x8x128xf32>
    tpu.vector_store %arg12[%c0_42, %c0_43, %c0_44], %107 {strides = array<i32>} : memref<2x8x128xf32, #tpu.memory_space<vmem>>, vector<2x8x128xf32>,
    %109 = tpu.concatenate %20, %21, %30, %31 in 1 : vector<4x16xf32>, vector<4x16xf32>, vector<4x16xf32>, vector<4x16xf32> -> vector<4x64xf32>
    %110 = vector.shape_cast %109 : vector<4x64xf32> to vector<2x2x64xf32>
    %c0_45 = arith.constant 0 : index
    %c0_46 = arith.constant 0 : index
    %c0_47 = arith.constant 0 : index
    %111 = vector.load %arg11[%c0_45, %c0_46, %c0_47] : memref<2x2x64xf32, #tpu.memory_space<vmem>>, vector<2x2x64xf32>
    tpu.vector_store %arg11[%c0_45, %c0_46, %c0_47], %110 {strides = array<i32>} : memref<2x2x64xf32, #tpu.memory_space<vmem>>, vector<2x2x64xf32>,
    return
  }
  func.func @transform_0(%arg0: i32) -> (i32, i32, i32, i32) {
    %c0_i32 = arith.constant 0 : i32
    %c0_i32_0 = arith.constant 0 : i32
    %c0_i32_1 = arith.constant 0 : i32
    %c0_i32_2 = arith.constant 0 : i32
    %c0_i32_3 = arith.constant 0 : i32
    return %c0_i32, %c0_i32_0, %c0_i32_1, %c0_i32_2 : i32, i32, i32, i32
  }
  func.func @transform_1(%arg0: i32) -> (i32, i32, i32) {
    %c0_i32 = arith.constant 0 : i32
    %c0_i32_0 = arith.constant 0 : i32
    %c0_i32_1 = arith.constant 0 : i32
    %c0_i32_2 = arith.constant 0 : i32
    return %c0_i32, %c0_i32_0, %c0_i32_1 : i32, i32, i32
  }
  func.func @transform_2(%arg0: i32) -> (i32, i32, i32) {
    %c0_i32 = arith.constant 0 : i32
    %c0_i32_0 = arith.constant 0 : i32
    %c0_i32_1 = arith.constant 0 : i32
    %c0_i32_2 = arith.constant 0 : i32
    return %c0_i32, %c0_i32_0, %c0_i32_1 : i32, i32, i32
  }
  func.func @transform_3(%arg0: i32) -> (i32, i32) {
    %c0_i32 = arith.constant 0 : i32
    %c0_i32_0 = arith.constant 0 : i32
    %c0_i32_1 = arith.constant 0 : i32
    return %c0_i32, %c0_i32_0 : i32, i32
  }
  func.func @transform_4(%arg0: i32) -> (i32, i32) {
    %c0_i32 = arith.constant 0 : i32
    %c0_i32_0 = arith.constant 0 : i32
    %c0_i32_1 = arith.constant 0 : i32
    return %c0_i32, %c0_i32_0 : i32, i32
  }
  func.func @transform_5(%arg0: i32) -> (i32, i32) {
    %c0_i32 = arith.constant 0 : i32
    %c0_i32_0 = arith.constant 0 : i32
    %c0_i32_1 = arith.constant 0 : i32
    return %c0_i32, %c0_i32_0 : i32, i32
  }
  func.func @transform_6(%arg0: i32) -> (i32, i32) {
    %c0_i32 = arith.constant 0 : i32
    %c0_i32_0 = arith.constant 0 : i32
    %c0_i32_1 = arith.constant 0 : i32
    return %c0_i32, %c0_i32_0 : i32, i32
  }
  func.func @transform_7(%arg0: i32) -> (i32, i32) {
    %c0_i32 = arith.constant 0 : i32
    %c0_i32_0 = arith.constant 0 : i32
    %c0_i32_1 = arith.constant 0 : i32
    return %c0_i32, %c0_i32_0 : i32, i32
  }
  func.func @transform_8(%arg0: i32) -> (i32, i32) {
    %c0_i32 = arith.constant 0 : i32
    %c0_i32_0 = arith.constant 0 : i32
    %c0_i32_1 = arith.constant 0 : i32
    return %c0_i32, %c0_i32_0 : i32, i32
  }
  func.func @transform_9(%arg0: i32) -> (i32, i32) {
    %c0_i32 = arith.constant 0 : i32
    %c0_i32_0 = arith.constant 0 : i32
    %c0_i32_1 = arith.constant 0 : i32
    return %c0_i32, %c0_i32_0 : i32, i32
  }
  func.func @transform_10(%arg0: i32) -> (i32, i32, i32) {
    %c0_i32 = arith.constant 0 : i32
    %c0_i32_0 = arith.constant 0 : i32
    %c0_i32_1 = arith.constant 0 : i32
    %c0_i32_2 = arith.constant 0 : i32
    return %c0_i32, %c0_i32_0, %c0_i32_1 : i32, i32, i32
  }
  func.func @transform_11(%arg0: i32) -> (i32, i32, i32) {
    %c0_i32 = arith.constant 0 : i32
    %c0_i32_0 = arith.constant 0 : i32
    %c0_i32_1 = arith.constant 0 : i32
    %c0_i32_2 = arith.constant 0 : i32
    return %c0_i32, %c0_i32_0, %c0_i32_1 : i32, i32, i32
  }
}

</mosaic_0001>

<bundles_post_ra>
// kernel: self_attn_cvae_forward.1
= control target key start
LH: loop header
LB: loop body
LE: loop exit
PB: predicated region body
PF: predicated region fallthrough
CT: control target
= control target key end

     0   :  { %vm44_vm0 = vcmask 261120   ;;  %v1235_v8 = vmov 0.0|0.0   ;;  %s1565_s0 = inlined_call_operand.vmem [shape: f32[2,2,8,32], index: 0, kind: input, shape index: {}]   ;;  %s1566_s1 = inlined_call_operand.vmem [shape: f32[2,8,32], index: 1, kind: input, shape index: {}]   ;;  %s1567_s2 = inlined_call_operand.vmem [shape: f32[2,2,16], index: 2, kind: input, shape index: {}]   ;;  %s1568_s3 = inlined_call_operand.vmem [shape: f32[65,64], index: 3, kind: input, shape index: {}]   ;;  %s1569_s4 = inlined_call_operand.vmem [shape: f32[33,32], index: 4, kind: input, shape index: {}]   ;;  %s1570_s5 = inlined_call_operand.vmem [shape: f32[17,16], index: 5, kind: input, shape index: {}]   ;;  %s1571_s6 = inlined_call_operand.vmem [shape: f32[33,16], index: 6, kind: input, shape index: {}]   ;;  %s1572_s7 = inlined_call_operand.vmem [shape: f32[49,32], index: 7, kind: input, shape index: {}]   ;;  %s1573_s8 = inlined_call_operand.vmem [shape: f32[32,32], index: 8, kind: input, shape index: {}]   ;;  %s1574_s9 = inlined_call_operand.vmem [shape: f32[33,128], index: 9, kind: input, shape index: {}]   ;;  %s1575_s10 = inlined_call_operand.vmem [shape: f32[2,2,64], index: 10, kind: output, shape index: {0}]   ;;  %s1576_s11 = inlined_call_operand.hbm [shape: f32[2,8,128], index: 11, kind: output, shape index: {1}]  }
   0x1   :  { %v1312_v0 = vld [vmem:[%s1566_s1] sm:$0xff]  ;;  %v1317_v1 = vld [vmem:[%s1566_s1 + $0x8] sm:$0xff]  ;;  %1119 = vmatprep.subr.bf16.mxu0 %v1235_v8  ;;  %v116_v10 = vld [vmem:[%s1568_s3 + $0x10] sm:$0xff]  ;;  %1131 = vmatprep.subr.bf16.mxu1 %v1235_v8 }
   0x2   :  { %v78_v2 = vsel %vm44_vm0, %v1312_v0, 0.0  ;;  %v85_v3 = vsel %vm44_vm0, %v1317_v1, 0.0  ;;  %v114_v4 = vld [vmem:[%s1568_s3] sm:$0xff]  ;;  %v115_v5 = vld [vmem:[%s1568_s3 + $0x8] sm:$0xff]  ;;  %v117_v11 = vld [vmem:[%s1568_s3 + $0x18] sm:$0xff] }
   0x3   :  { %v79_v6 = vrot.slane %v78_v2, 4  ;;  %v86_v7 = vrot.slane %v85_v3, 4  ;;  %v1120_v9 = vpack.c.bf16 %v115_v5, %v114_v4  ;;  %v118_v12 = vld [vmem:[%s1568_s3 + $0x20] sm:$0xff]  ;;  %v119_v13 = vld [vmem:[%s1568_s3 + $0x28] sm:$0xff]  ;;  %v1123_v16 = vpack.c.bf16 %v117_v11, %v116_v10  ;;  %v40_v19 = vld [vmem:[%s1565_s0 + $0x10] sm:$0xff] }
   0x4   :  { %v38_v17 = vld [vmem:[%s1565_s0] sm:$0xff]  ;;  %v39_v18 = vld [vmem:[%s1565_s0 + $0x8] sm:$0xff]  ;;  %v41_v20 = vld [vmem:[%s1565_s0 + $0x18] sm:$0xff]  ;;  %v59_v23 = vsel %vm44_vm0, %v40_v19, 0.0 }
   0x5   :  { %v80_v14 = vadd.f32 %v79_v6, %v78_v2  ;;  %v87_v15 = vadd.f32 %v86_v7, %v85_v3  ;;  %1121 = vmatpush3.bf16.msra.mxu0 %v1120_v9  ;;  %v45_v21 = vsel %vm44_vm0, %v38_v17, 0.0  ;;  %v52_v22 = vsel %vm44_vm0, %v39_v18, 0.0 }
   0x6   :  { %1122 = vmatprep.subr.bf16.mxu0 %v1235_v8  ;;  %v46_v26 = vrot.slane %v45_v21, 4  ;;  %v53_v27 = vrot.slane %v52_v22, 4 }
   0x7   :  { %v81_v24 = vrot.slane %v80_v14, 2  ;;  %v88_v25 = vrot.slane %v87_v15, 2 }
   0x8   :  { %17 = vsyncpa [#allocation3], 0  ;;  %v1126_v28 = vpack.c.bf16 %v119_v13, %v118_v12  ;;  %v60_v29 = vrot.slane %v59_v23, 4  ;;  %v66_v30 = vsel %vm44_vm0, %v41_v20, 0.0  ;;  %v120_v33 = vld [vmem:[%s1568_s3 + $0x30] sm:$0xff]  ;;  %v121_v34 = vld [vmem:[%s1568_s3 + $0x38] sm:$0xff]  ;;  %v47_v35 = vadd.f32 %v46_v26, %v45_v21 }
   0x9   :  { %v82_v31 = vadd.f32 %v81_v24, %v80_v14  ;;  %v89_v32 = vadd.f32 %v88_v25, %v87_v15  ;;  %1124 = vmatpush3.bf16.msra.mxu0 %v1123_v16  ;;  %v54_v36 = vadd.f32 %v53_v27, %v52_v22  ;;  %v67_v38 = vrot.slane %v66_v30, 4  ;;  %s1238_s24 = smov 32   ;;  %v202_v15 = vld [vmem:[%s1569_s4] sm:$0xff]  ;;  %v203_v16 = vld [vmem:[%s1569_s4 + $0x8] sm:$0xff]  ;;  %v204_v24 = vld [vmem:[%s1569_s4 + $0x10] sm:$0xff]  ;;  %s1240_s18 = smov 112  }
   0xa   :  { %1125 = vmatprep.subr.bf16.mxu0 %v1235_v8  ;;  %v61_v37 = vadd.f32 %v60_v29, %v59_v23  ;;  %vm1236_vm1 = vmmov 0   ;;  %v1237_v39 = vmov 0.0   ;;  %v48_v42 = vrot.slane %v47_v35, 2  ;;  %v978_v18 = vld [vmem:[%s1568_s3 + $0x40] ss:$0 sm:$0xff]  ;;  %v205_v25 = vld [vmem:[%s1569_s4 + $0x18] sm:$0xff] }
   0xb   :  { %1050 = vmatprep.mubr.msk.f32.mxu0 %vm1236_vm1, %v1237_v39  ;;  %v83_v40 = vrot.slane %v82_v31, 1  ;;  %v90_v41 = vrot.slane %v89_v32, 1  ;;  %v55_v43 = vrot.slane %v54_v36, 2  ;;  %1061 = vmatprep.mubr.msk.f32.mxu1 %vm1236_vm1, %v1237_v39  ;;  %v1129_v44 = vpack.c.bf16 %v121_v34, %v120_v33  ;;  %s1241_s19 = smov 96   ;;  %s1246_s0 = smov [#allocation2]  }
   0xc   :  { %v62_v45 = vrot.slane %v61_v37, 2  ;;  %v68_v46 = vadd.f32 %v67_v38, %v66_v30  ;;  %v49_v49 = vadd.f32 %v48_v42, %v47_v35  ;;  %vm98_vm2 = vcmask 1041409   ;;  %v318_v30 = vld [vmem:[%s1570_s5] sm:$0xff]  ;;  %s965_s22 = sshll.u32 %s1246_s0, 4  ;;  %s966_s22 = int_to_ptr.vmem [resolvable:$true] %s965_s22 }
   0xd   :  { %v84_v47 = vadd.f32 %v83_v40, %v82_v31  ;;  %v91_v48 = vadd.f32 %v90_v41, %v89_v32  ;;  %1127 = vmatpush3.bf16.msra.mxu0 %v1126_v28  ;;  %v56_v50 = vadd.f32 %v55_v43, %v54_v36  ;;  %vm100_vm3 = vcmask 1042434   ;;  %v319_v31 = vld [vmem:[%s1570_s5 + $0x8] sm:$0xff]  ;;  %v283_v41 = vld [vmem:[%s1567_s2] sm:$0x3]  ;;  %s1211_s23 = scalar_lea.vmem %s966_s22, 256  ;;  %p1216_p1 = scmp.lt.s32.totalorder %s966_s22, %s966_s22 }
   0xe   :  { %1128 = vmatprep.subr.bf16.mxu0 %v1235_v8  ;;  %v63_v51 = vadd.f32 %v62_v45, %v61_v37  ;;  %v69_v52 = vrot.slane %v68_v46, 2  ;;  %v50_v55 = vrot.slane %v49_v49, 1  ;;  %vm102_vm4 = vcmask 1043459   ;;  %p1212_p0 = scmp.ne.s32.totalorder %s966_s22, %s1211_s23  ;;  %p1217_p2 = scmp.lt.s32.totalorder %s1211_s23, %s1211_s23 }
   0xf   :  { %v92_v53 = vmul.f32 0.125, %v84_v47  ;;  %v93_v54 = vmul.f32 0.125, %v91_v48  ;;  %v57_v56 = vrot.slane %v56_v50, 1  ;;  %vm127_vm5 = vcmask 523264  }
  0x10   :  { %v64_v57 = vrot.slane %v63_v51, 1  ;;  %v70_v58 = vadd.f32 %v69_v52, %v68_v46  ;;  %v51_v60 = vadd.f32 %v50_v55, %v49_v49  ;;  %v1132_v17 = vpack.c.bf16 %v203_v16, %v202_v15  ;;  %v476_v52 = vld [vmem:[%s1571_s6 + $0x8] sm:$0xff]  ;;  %p1218_p3 = por %p1217_p2, %p1216_p1 }
  0x11   :  { %v107_v59 = vsel %vm98_vm2, %v93_v54, %v92_v53  ;;  %1130 = vmatpush3.bf16.msra.mxu0 %v1129_v44  ;;  %v58_v61 = vadd.f32 %v57_v56, %v56_v50  ;;  %v1135_v26 = vpack.c.bf16 %v205_v25, %v204_v24  ;;  %v1239_v27 = vmov 1983009808   ;;  %v284_v44 = vld [vmem:[%s1567_s2 + $0x2] sm:$0x3]  ;;  %v477_v56 = vld [vmem:[%s1571_s6 + $0x10] sm:$0xff] }
  0x12   :  { %v108_v62 = vsel %vm100_vm3, %v92_v53, %v107_v59  ;;  %v65_v63 = vadd.f32 %v64_v57, %v63_v51  ;;  %v71_v2 = vrot.slane %v70_v58, 1  ;;  %1146 = vmatprep.subr.bf16.mxu0 %v1235_v8  ;;  %v74_v4 = vmul.f32 0.125, %v51_v60  ;;  %1133 = vmatpush3.bf16.msra.mxu1 %v1132_v17  ;;  %v475_v51 = vld [vmem:[%s1571_s6] sm:$0xff]  ;;  %v478_v57 = vld [vmem:[%s1571_s6 + $0x18] sm:$0xff]  ;;  %p1219_p4 = pnand %p1218_p3, %p1212_p0 }
  0x13   :  { %v109_v3 = vsel %vm102_vm4, %v93_v54, %v108_v62  ;;  %v75_v5 = vmul.f32 0.125, %v58_v61  ;;  %1134 = vmatprep.subr.bf16.mxu1 %v1235_v8  ;;  %v290_v28 = vunpack.c.l.s4 %v1239_v27  ;;  %v292_v29 = vlaneseq }
  0x14   :  { %110 = vrot.lane.b32.xlu0 %v109_v3, %s1238_s24  ;;  %v72_v6 = vadd.f32 %v71_v2, %v70_v58  ;;  %v76_v7 = vmul.f32 0.125, %v65_v63  ;;  %v1138_v32 = vpack.c.bf16 %v319_v31, %v318_v30  ;;  %vm331_vm6 = vcmask 130048  }
  0x15   :  { %v99_v9 = vsel %vm98_vm2, %v75_v5, %v74_v4  ;;  %v291_v33 = vunpack.c.0.s8 %v290_v28  ;;  %v1409_v34 = vshrl.u32 %v292_v29, 7  ;;  %v1141_v54 = vpack.c.bf16 %v476_v52, %v475_v51 }
  0x16   :  { %v77_v10 = vmul.f32 0.125, %v72_v6  ;;  %v101_v11 = vsel %vm100_vm3, %v76_v7, %v99_v9  ;;  %1136 = vmatpush3.bf16.msra.mxu1 %v1135_v26  ;;  %v1144_v58 = vpack.c.bf16 %v478_v57, %v477_v56  ;;  %vm410_vm7 = vcmask 125952  }
  0x17   :  { %1137 = vmatprep.subr.bf16.mxu1 %v1235_v8  ;;  %v1417_v35 = vsub.s32 %v291_v33, %v1409_v34  ;;  %vm438_vm8 = vcmask 1041408   ;;  %vm630_vm9 = vcmask 517376   ;;  %vm471_vm10 = vcmask 123904  }
  0x18   :  { %v103_v12 = vsel %vm102_vm4, %v77_v10, %v101_v11  ;;  %v1242_v11 = vmov 0   ;;  %vm650_vm11 = vcmask 392192   ;;  %vm955_vm12 = vcmask 517120  }
  0x19   :  { %1062 = vmatmul.mubr.msk.f32.vlgmr.msra.gmra.mrb[0].mxu1 %vm44_vm0, %v103_v12  ;;  %1186 = vset.pattern.permute.xlu1 %v1242_v11 }
  0x1a   :  { %1139 = vmatpush3.bf16.msra.mxu1 %v1138_v32  ;;  %1068 = vmatprep.mubr.msk.f32.mxu1 %vm1236_vm1, %v1237_v39 }
  0x1b   :  { %1140 = vmatprep.subr.bf16.mxu1 %v1235_v8  ;;  %1185 = vset.pattern.permute.xlu0 %v1242_v11 }
  0x86   :  { %v111_v13 = vpop.permute.xlu0 %110 }
  0x87   :  { %v113_v14 = vsel %vm44_vm0, %v103_v12, %v111_v13  ;;  %v1243_v12 = vmov 269488144  }
  0x88   :  { %1051 = vmatmul.mubr.msk.f32.vlgmr.msra.gmra.mrb[0].mxu0 %vm127_vm5, %v113_v14  ;;  %v416_v13 = vunpack.c.l.s4 %v1243_v12  ;;  %v1244_v14 = vmov 842150450  }
  0x89   :  { %1094 = vmatprep.mubr.msk.f32.mxu0 %vm1236_vm1, %v1237_v39  ;;  %v423_v15 = vunpack.c.l.s4 %v1244_v14 }
  0x8a   :  { %v417_v16 = vunpack.c.0.s8 %v416_v13 }
  0x8b   :  { %v424_v17 = vunpack.c.0.s8 %v423_v15 }
  0xec   :  { %v1459_v60 = vpop.f32.mrb[0].mxu1 }
  0xed   :  { %v1063_v61 = vpop.f32.mrb[1].mxu1 }
  0xee   :  { %v635_v61 = vld [vmem:[%s1572_s7 + $0x8] sm:$0xff] }
 0x15b   :  { %v197_v19 = vpop.f32.mrb[0].mxu0 }
 0x15c   :  { %v1393_v20 = vadd.f32 %v978_v18, %v197_v19  ;;  %v1052_v21 = vpop.f32.mrb[1].mxu0  ;;  %v1468_v18 = vsub.s32 %v417_v16, %v1409_v34  ;;  %v427_v19 = vsub.s32 %v424_v17, %v1409_v34 }
 0x15e   :  { %v285_v22 = vmul.f32 0.5, %v1393_v20  ;;  %v312_v42 = vrot.slane %v1393_v20, %v1417_v35 }
 0x160   :  { %v286_v23 = vmul.f32 1.442695, %v285_v22  ;;  %v313_v47 = vcombine.high %v312_v42, %v312_v42 }
 0x162   :  { %1187 = vpow2.f32 %v286_v23 }
 0x163   :  { %1189 = vtanh.f32 %v1393_v20 }
 0x16c   :  { %v1188_v36 = vpop.eup %1187 }
 0x16d   :  { %v295_v37 = vrot.slane %v1188_v36, %v1417_v35  ;;  %v1422_v40 = vpop.eup %1189 }
 0x16f   :  { %297 = vrot.lane.b32.xlu0 %v295_v37, %s1240_s18  ;;  %v296_v38 = vcombine.high %v295_v37, %v295_v37 }
 0x171   :  { %299 = vrot.lane.b32.xlu1 %v296_v38, %s1240_s18 }
 0x175   :  { %481 = vrot.lane.b32.xlu1 %v1422_v40, %s1241_s19 }
 0x1e1   :  { %v298_v43 = vpop.permute.xlu0 %297 }
 0x1e2   :  { %v303_v45 = vmul.f32 %v298_v43, %v283_v41 }
 0x1e3   :  { %v300_v46 = vpop.permute.xlu1 %299 }
 0x1e4   :  { %v304_v48 = vmul.f32 %v300_v46, %v284_v44  ;;  %v1433_v49 = vadd.f32 %v312_v42, %v303_v45 }
 0x1e6   :  { %v1435_v50 = vadd.f32 %v313_v47, %v304_v48 }
 0x1e7   :  { %v482_v59 = vpop.permute.xlu1 %481 }
 0x1e8   :  { %v323_v53 = vcombine.low %v1433_v49, %v1435_v50 }
 0x1ea   :  { %v330_v55 = vrot.slane %v323_v53, %v1417_v35 }
 0x1ec   :  { %1069 = vmatmul.mubr.msk.f32.vlgmr.msra.gmra.mrb[2].mxu1 %vm331_vm6, %v330_v55 }
 0x1ed   :  { %1142 = vmatpush3.bf16.msra.mxu1 %v1141_v54  ;;  %1079 = vmatprep.mubr.msk.f32.mxu1 %vm1236_vm1, %v1237_v39  ;;  %v983_v39 = vld [vmem:[%s1570_s5 + $0x10] ss:$0 sm:$0xff] }
 0x1ee   :  { %1143 = vmatprep.subr.bf16.mxu1 %v1235_v8 }
 0x1f1   :  { %1145 = vmatpush3.bf16.msra.mxu1 %v1144_v58 }
 0x1f4   :  { %1080 = vmatmul.mubr.msk.f32.vlgmr.msra.gmra.mrb[4].mxu1 %vm44_vm0, %v482_v59  ;;  %v634_v59 = vld [vmem:[%s1572_s7] sm:$0xff] }
 0x1f5   :  { %1105 = vmatprep.mubr.msk.f32.mxu1 %vm44_vm0, %v1312_v0  ;;  %v985_v0 = vld [vmem:[%s1571_s6 + $0x20] ss:$0 sm:$0xff] }
 0x2bf   :  { %v400_v62 = vpop.f32.mrb[2].mxu1 }
 0x2c0   :  { %1191 = vtanh.f32 %v400_v62  ;;  %v1070_v63 = vpop.f32.mrb[3].mxu1  ;;  %v636_v62 = vld [vmem:[%s1572_s7 + $0x10] sm:$0xff] }
 0x2c1   :  { %v1147_v63 = vpack.c.bf16 %v635_v61, %v634_v59 }
 0x2c3   :  { %1148 = vmatpush3.bf16.msra.mxu0 %v1147_v63 }
 0x2c4   :  { %1149 = vmatprep.subr.bf16.mxu0 %v1235_v8 }
 0x2c7   :  { %v551_v2 = vpop.f32.mrb[4].mxu1 }
 0x2c8   :  { %1193 = vtanh.f32 %v551_v2  ;;  %v1081_v3 = vpop.f32.mrb[5].mxu1  ;;  %v637_v2 = vld [vmem:[%s1572_s7 + $0x18] sm:$0xff] }
 0x2c9   :  { %v1150_v3 = vpack.c.bf16 %v637_v2, %v636_v62 }
 0x2ca   :  { %v1192_v4 = vpop.eup %1191 }
 0x2cb   :  { %v409_v5 = vmul.f32 %v1192_v4, %v983_v39  ;;  %v638_v39 = vld [vmem:[%s1572_s7 + $0x20] sm:$0xff]  ;;  %v639_v4 = vld [vmem:[%s1572_s7 + $0x28] sm:$0xff]  ;;  %1151 = vmatpush3.bf16.msra.mxu0 %v1150_v3 }
 0x2cc   :  { %1152 = vmatprep.subr.bf16.mxu0 %v1235_v8  ;;  %v727_v8 = vld [vmem:[%s1573_s8 + $0x18] sm:$0xff] }
 0x2cd   :  { %v411_v6 = vsel %vm410_vm7, %v409_v5, 0.0  ;;  %v1153_v5 = vpack.c.bf16 %v639_v4, %v638_v39 }
 0x2ce   :  { %412 = vadd.xlane.f32.xlu1 %v411_v6  ;;  %v724_v6 = vld [vmem:[%s1573_s8] sm:$0xff] }
 0x2cf   :  { %1154 = vmatpush3.bf16.msra.mxu0 %v1153_v5  ;;  %v990_v5 = vld [vmem:[%s1574_s9 + $0x20] ss:$0 sm:$0xff] }
 0x2d2   :  { %v1194_v7 = vpop.eup %1193 }
 0x2d3   :  { %v560_v9 = vmul.f32 %v1194_v7, %v985_v0  ;;  %v725_v0 = vld [vmem:[%s1573_s8 + $0x8] sm:$0xff] }
 0x2d4   :  { %v1155_v7 = vpack.c.bf16 %v725_v0, %v724_v6 }
 0x2d5   :  { %v561_v10 = vsel %vm410_vm7, %v560_v9, 0.0  ;;  %v726_v9 = vld [vmem:[%s1573_s8 + $0x10] sm:$0xff] }
 0x2d6   :  { %562 = vadd.xlane.f32.xlu0 %v561_v10  ;;  %1156 = vmatprep.subr.bf16.mxu1 %v1155_v7  ;;  %v600_v10 = vrot.slane %v1422_v40, %v1417_v35  ;;  %v1159_v11 = vpack.c.bf16 %v727_v8, %v726_v9  ;;  %v980_v40 = vld [vmem:[%s1569_s4 + $0x20] ss:$0 sm:$0xff] }
 0x2d7   :  { %1158 = vmatpush3.bf16.msra.mxu1 %v1155_v7 }
 0x2d8   :  { %1160 = vmatprep.subr.bf16.mxu1 %v1159_v11  ;;  %v601_v15 = vcombine.high %v600_v10, %v600_v10 }
 0x2db   :  { %1162 = vmatpush3.bf16.msra.mxu1 %v1159_v11 }
 0x2de   :  { %1106 = vmatmul.mubr.msk.f32.vlgmr.msra.gmra.mrb[6].mxu1 %vm44_vm0, %v1317_v1 }
 0x35b   :  { %v413_v21 = vpop.xlane.xlu1 %412 }
 0x35c   :  { %v421_v22 = vrot.slane %v413_v21, %v1468_v18  ;;  %v428_v23 = vrot.slane %v413_v21, %v427_v19 }
 0x35e   :  { %v431_v24 = vmax.f32 %v421_v22, %v428_v23 }
 0x360   :  { %v432_v25 = vsub.f32 %v421_v22, %v431_v24  ;;  %v433_v26 = vsub.f32 %v428_v23, %v431_v24  ;;  %v280_v24 = vadd.f32 %v980_v40, %v1459_v60 }
 0x362   :  { %v434_v28 = vmul.f32 1.442695, %v432_v25  ;;  %v436_v31 = vmul.f32 1.442695, %v433_v26 }
 0x363   :  { %v563_v27 = vpop.xlane.xlu0 %562 }
 0x364   :  { %v571_v29 = vrot.slane %v563_v27, %v1468_v18  ;;  %v578_v30 = vrot.slane %v563_v27, %v427_v19  ;;  %1195 = vpow2.f32 %v434_v28 }
 0x365   :  { %1197 = vpow2.f32 %v436_v31 }
 0x366   :  { %v581_v32 = vmax.f32 %v571_v29, %v578_v30 }
 0x368   :  { %v582_v33 = vsub.f32 %v571_v29, %v581_v32  ;;  %v583_v36 = vsub.f32 %v578_v30, %v581_v32 }
 0x36a   :  { %v584_v37 = vmul.f32 1.442695, %v582_v33  ;;  %v586_v38 = vmul.f32 1.442695, %v583_v36 }
 0x36c   :  { %1199 = vpow2.f32 %v584_v37 }
 0x36d   :  { %1201 = vpow2.f32 %v586_v38 }
 0x36e   :  { %v1196_v41 = vpop.eup %1195 }
 0x36f   :  { %v1198_v42 = vpop.eup %1197  ;;  %v439_v44 = vsel %vm438_vm8, %v1196_v41, 0.0 }
 0x370   :  { %v440_v45 = vsel %vm438_vm8, %v1198_v42, 0.0 }
 0x371   :  { %v441_v52 = vadd.f32 %v440_v45, %v439_v44  ;;  %v849_v44 = vld [vmem:[%s1574_s9 + $0x18] sm:$0xff] }
 0x376   :  { %v1200_v43 = vpop.eup %1199 }
 0x377   :  { %v1202_v46 = vpop.eup %1201  ;;  %v588_v47 = vsel %vm438_vm8, %v1200_v43, 0.0 }
 0x378   :  { %v589_v48 = vsel %vm438_vm8, %v1202_v46, 0.0 }
 0x379   :  { %v590_v51 = vadd.f32 %v589_v48, %v588_v47 }
 0x37b   :  { %1203 = vrcp.f32 %v590_v51  ;;  %v986_v51 = vld [vmem:[%s1572_s7 + $0x30] ss:$0 sm:$0xff] }
 0x37c   :  { %1205 = vrcp.f32 %v441_v52 }
 0x385   :  { %v1204_v53 = vpop.eup %1203 }
 0x386   :  { %v593_v54 = vmul.f32 %v1204_v53, %v1202_v46  ;;  %v592_v55 = vmul.f32 %v1204_v53, %v1200_v43  ;;  %v1206_v56 = vpop.eup %1205  ;;  %v1245_v46 = vmov 1966171168  }
 0x387   :  { %v443_v57 = vmul.f32 %v1206_v56, %v1196_v41  ;;  %v444_v58 = vmul.f32 %v1206_v56, %v1198_v42  ;;  %v846_v42 = vld [vmem:[%s1574_s9] sm:$0xff]  ;;  %v811_v47 = vunpack.c.l.s4 %v1245_v46 }
 0x388   :  { %618 = vperm.xlu1 %1186, %v593_v54   ;;  %606 = vperm.xlu0 %1185, %v592_v55  }
 0x389   :  { %v812_v48 = vunpack.c.0.s8 %v811_v47 }
 0x38b   :  { %v815_v52 = vsub.s32 %v812_v48, %v1409_v34 }
 0x38c   :  { %447 = vperm.xlu1 %1186, %v443_v57   ;;  %v834_v57 = vsub.s32 0, %v1409_v34 }
 0x390   :  { %459 = vperm.xlu1 %1186, %v444_v58  }
 0x407   :  { %v607_v12 = vpop.permute.xlu0 %606  ;;  %v619_v13 = vpop.permute.xlu1 %618 }
 0x408   :  { %v615_v14 = vrot.slane %v607_v12, %v1468_v18  ;;  %v627_v16 = vrot.slane %v619_v13, %v1468_v18 }
 0x40a   :  { %v628_v17 = vmul.f32 %v615_v14, %v600_v10  ;;  %v629_v19 = vmul.f32 %v627_v16, %v601_v15 }
 0x40b   :  { %v448_v25 = vpop.permute.xlu1 %447 }
 0x40c   :  { %v631_v21 = vsel %vm630_vm9, %v628_v17, 0.0  ;;  %v632_v22 = vsel %vm630_vm9, %v629_v19, 0.0  ;;  %v456_v28 = vrot.slane %v448_v25, %v1468_v18 }
 0x40d   :  { %v633_v23 = vadd.f32 %v632_v22, %v631_v21 }
 0x40e   :  { %v469_v29 = vmul.f32 %v456_v28, %v1433_v49  ;;  %v1107_v49 = vpop.f32.mrb[6].mxu1 }
 0x40f   :  { %642 = vrot.lane.b32.xlu1 %v633_v23, %s1240_s18  ;;  %v460_v26 = vpop.permute.xlu1 %459  ;;  %v800_v41 = vpop.f32.mrb[7].mxu1 }
 0x410   :  { %v468_v27 = vrot.slane %v460_v26, %v1468_v18  ;;  %v472_v31 = vsel %vm471_vm10, %v469_v29, 0.0 }
 0x412   :  { %v470_v1 = vmul.f32 %v468_v27, %v1435_v50 }
 0x413   :  { %939 = vrot.lane.b32.xlu1 %v280_v24, %s1238_s24 }
 0x414   :  { %v473_v30 = vsel %vm471_vm10, %v470_v1, 0.0 }
 0x415   :  { %v474_v32 = vadd.f32 %v473_v30, %v472_v31 }
 0x481   :  { %v643_v33 = vpop.permute.xlu1 %642 }
 0x482   :  { %v645_v60 = vsel %vm331_vm6, %v474_v32, %v643_v33 }
 0x483   :  { %1095 = vmatmul.mubr.msk.f32.vlgmr.msra.gmra.mrb[2].mxu0 %vm650_vm11, %v645_v60 }
 0x485   :  { %v940_v36 = vpop.permute.xlu1 %939 }
 0x486   :  { %v942_v37 = vsel %vm44_vm0, %v1393_v20, %v940_v36  ;;  %v847_v20 = vld [vmem:[%s1574_s9 + $0x8] sm:$0xff] }
 0x487   :  { %v943_v38 = vsel %vm650_vm11, %v942_v37, %v940_v36  ;;  %v1163_v43 = vpack.c.bf16 %v847_v20, %v846_v42 }
 0x488   :  { %v951_v18 = vrot.slane %v943_v38, %v1417_v35  ;;  %v848_v35 = vld [vmem:[%s1574_s9 + $0x10] sm:$0xff] }
 0x489   :  { %v1167_v45 = vpack.c.bf16 %v849_v44, %v848_v35  ;;  %1164 = vmatprep.subr.bf16.mxu0 %v1163_v43 }
 0x48a   :  { %v952_v50 = vcombine.high %v951_v18, %v951_v18  ;;  %956 = vst.msk [vmem:[%s1575_s10] sm:$0x3] %vm955_vm12, %v951_v18  ;;  %1166 = vmatpush3.bf16.msra.mxu0 %v1163_v43 }
 0x48b   :  { %1168 = vmatprep.subr.bf16.mxu0 %v1167_v45 }
 0x48c   :  { %957 = vst.msk [vmem:[%s1575_s10 + $0x2] sm:$0x3] %vm955_vm12, %v952_v50 }
 0x48e   :  { %1170 = vmatpush3.bf16.msra.mxu0 %v1167_v45 }
 0x556   :  { %v720_v53 = vpop.f32.mrb[2].mxu0 }
 0x557   :  { %v721_v54 = vadd.f32 %v986_v51, %v720_v53  ;;  %v1096_v55 = vpop.f32.mrb[3].mxu0 }
 0x559   :  { %v816_v56 = vrot.slane %v721_v54, %v815_v52 }
 0x55b   :  { %v817_v58 = vcombine.high %v816_v56, %v816_v56  ;;  %v824_v59 = vrot.slane %v816_v56, %v815_v52 }
 0x55d   :  { %v831_v61 = vrot.slane %v817_v58, %v815_v52  ;;  %v835_v62 = vrot.slane %v824_v59, %v834_v57 }
 0x55f   :  { %v839_v63 = vrot.slane %v831_v61, %v834_v57  ;;  %v842_v2 = vadd.f32 %v835_v62, %v800_v41 }
 0x561   :  { %v843_v3 = vadd.f32 %v1107_v49, %v839_v63  ;;  %1207 = vtanh.f32 %v842_v2 }
 0x563   :  { %1209 = vtanh.f32 %v843_v3 }
 0x56b   :  { %v1208_v39 = vpop.eup %1207 }
 0x56c   :  { %1116 = vmatprep.mubr.msk.f32.mxu0 %vm44_vm0, %v1208_v39 }
 0x56d   :  { %v1210_v4 = vpop.eup %1209 }
 0x56e   :  { %1117 = vmatmul.mubr.msk.f32.vlgmr.msra.gmra.mrb[4].mxu0 %vm44_vm0, %v1210_v4 }
 0x641   :  { %v1118_v34 = vpop.f32.mrb[4].mxu0 }
 0x642   :  { %v933_v6 = vadd.f32 %v1118_v34, %v990_v5  ;;  %v927_v0 = vpop.f32.mrb[5].mxu0 }
 0x643   :  { %v928_v7 = vadd.f32 %v990_v5, %v927_v0 }
 0x644   :  { %937 = vst [vmem:[#allocation2 + $0x8] sm:$0xff] %v933_v6 }
 0x645   :  { %936 = vst [vmem:[#allocation2] sm:$0xff] %v928_v7 }
 0x646   :  { %1222 = shalt.err (!%p1219_p4)
}
 0x647   :  { %s1223_s9 = scalar_lea.hbm %s1576_s11, 256 }
 0x648   :  { %p1224_p5 = scmp.ne.s32.totalorder %s1576_s11, %s1223_s9  ;;  %p1227_p6 = scmp.lt.u32.totalorder %s1223_s9, %s1576_s11 }
 0x64a   :  { %p1229_p7 = pnand %p1227_p6, %p1224_p5 }
 0x64c   :  { %1232 = shalt.err (!%p1229_p7)
}
 0x64d   :  { %s1247_s29 = smov 128   ;;  %s1248_s30 = smov 8  }
 0x64e   :  { %971 = dma.vmem_to_hbm [thread:$0]  %s966_s22, 256, %s1576_s11, [#allocation3], %s1247_s29, %s1247_s29, %s1248_s30  }
 0x64f   :  { %1233 = dma.done.wait [#allocation3], 256  }
 0x650   :  { %1234 = vsyncadd [#allocation3], 4294967040 }
 0x651   :  { %977 = vsyncpa [#allocation3], 1 }

</bundles_post_ra>
